<compile_context>
chip_gen: v5e
topology: v5e:2x2
jax: 0.10.0
libtpu: 0.0.40
codegen_flags: <defaults>
</compile_context>

<pallas_src>
import jax
import jax.numpy as jnp
from jax.experimental import pallas as pl
from jax.experimental.pallas import tpu as pltpu

NORM_EPS = 1e-5               # nn.LayerNorm default
_BF16_MIN_DIM = 256           # use bf16 MXU inputs (f32 accumulate) at/above this dim
_STEP_VMEM_BUDGET = 12 << 20  # per-step working-set target (bytes, f32 basis)


def _patch_expand_kernel(x_ref, w_ref, gamma_ref, beta_ref, out_ref):
    """One (batch, token-tile) grid step.

    x_ref    : (1, C, TL)   f32, channel-major token tile (tokens in lanes)
    w_ref    : (2C, C)      f32 (or bf16 for large dim), nn.Linear weight (out, in)
    gamma_ref: (c, 1)       f32 LayerNorm weight, c = C // 2
    beta_ref : (c, 1)       f32 LayerNorm bias
    out_ref  : (1, 2C, TL)  f32
    """
    x = x_ref[0]                                     # (C, TL) f32
    w = w_ref[...]
    if w.dtype != x.dtype:                           # bf16 MXU path (large dim)
        x = x.astype(w.dtype)

    # Single fused expand matmul per step, f32 accumulation on the MXU.
    y = jnp.dot(w, x, preferred_element_type=jnp.float32)     # (2C, TL) f32

    c = y.shape[0] // 4
    gamma = gamma_ref[...]                           # (c, 1)
    beta = beta_ref[...]

    # The 2C output channels decompose as (p1, p2, c); after the pixel shuffle each
    # contiguous chunk of c channels is exactly one output pixel's feature vector,
    # so LayerNorm over the final channel dim == per-chunk LayerNorm here.
    # Per-chunk normalize + affine + direct full-lane store (no concatenate).
    for j in range(4):                               # static 4-iteration loop
        ch = y[j * c:(j + 1) * c, :]                 # (c, TL)
        mean = jnp.mean(ch, axis=0, keepdims=True)   # (1, TL)
        cen = ch - mean
        var = jnp.mean(cen * cen, axis=0, keepdims=True)       # biased (LayerNorm)
        inv = jax.lax.rsqrt(var + NORM_EPS)
        out_ref[0, j * c:(j + 1) * c, :] = (
            cen * inv * gamma + beta).astype(out_ref.dtype)


def _step_vmem_bytes(C, tl):
    # double-buffered input + output tiles (f32) + double-buffered weight (f32 basis).
    return 2 * (C * tl + 2 * C * tl) * 4 + 2 * (2 * C * C) * 4


def _select_token_tile(L, C, B):
    """Pick (L_pad, TL): TL divides L_pad, TL % 128 == 0 (or TL == L when tiny),
    per-step working set under budget, >= 2 grid steps when B == 1 if possible."""
    if L % 128 != 0:
        # Single full-L block only if it is genuinely small; otherwise pad to 128.
        if _step_vmem_bytes(C, L) <= _STEP_VMEM_BUDGET and (B >= 2 or L < 256):
            return L, L
        L_pad = ((L + 127) // 128) * 128
    else:
        L_pad = L
    cands = [t for t in range(128, L_pad + 1, 128) if L_pad % t == 0]
    fit = [t for t in cands if _step_vmem_bytes(C, t) <= _STEP_VMEM_BUDGET]
    if not fit:
        fit = [cands[0]]          # dim so large even TL=128 exceeds budget; best effort
    if B == 1:                    # keep both v7x TensorCores busy
        multi = [t for t in fit if L_pad // t >= 2]
        if multi:
            fit = multi
    return L_pad, max(fit)


def patch_expand_up_pallas(x, w_expand, gamma, beta, *, input_resolution=None):
    """x: (B, dim, D, H, W) f32; w_expand: (2*dim, dim) (nn.Linear weight, no bias);
    gamma, beta: (dim//2,) LayerNorm affine.  Returns (B, dim//2, D, 2H, 2W)."""
    B, C, D, H, W = x.shape
    if input_resolution is not None:
        assert tuple(input_resolution) == (D, H, W)
    L = D * H * W
    C2 = 2 * C
    c_out = C // 2

    L_pad, TL = _select_token_tile(L, C, B)
    num_t = L_pad // TL

    # Wrapper glue (free / tiny):
    x_cs = x.reshape(B, C, L).astype(jnp.float32)         # channel-major, free reshape
    if L_pad != L:
        x_cs = jnp.pad(x_cs, ((0, 0), (0, 0), (0, L_pad - L)))

    use_bf16 = C >= _BF16_MIN_DIM                          # v6e/v7x MXU lever; f32 accumulate
    w = jnp.asarray(w_expand, jnp.bfloat16 if use_bf16 else jnp.float32)   # (2C, C)
    gamma2 = jnp.asarray(gamma, jnp.float32).reshape(c_out, 1)
    beta2 = jnp.asarray(beta, jnp.float32).reshape(c_out, 1)

    vmem_limit = int(min(48 << 20, max(32 << 20, 2 * _step_vmem_bytes(C, TL))))

    grid_spec = pltpu.PrefetchScalarGridSpec(
        num_scalar_prefetch=0,
        grid=(B, num_t),
        in_specs=[
            pl.BlockSpec((1, C, TL), lambda b, t: (b, 0, t)),
            # Constant-index weight: DMA'd once, resident across the grid.
            pl.BlockSpec((C2, C), lambda b, t: (0, 0)),
            pl.BlockSpec((c_out, 1), lambda b, t: (0, 0)),
            pl.BlockSpec((c_out, 1), lambda b, t: (0, 0)),
        ],
        out_specs=pl.BlockSpec((1, C2, TL), lambda b, t: (b, 0, t)),
    )

    out_cs = pl.pallas_call(
        _patch_expand_kernel,
        out_shape=jax.ShapeDtypeStruct((B, C2, L_pad), jnp.float32),
        grid_spec=grid_spec,
        compiler_params=pltpu.CompilerParams(
            dimension_semantics=("parallel", "parallel"),
            vmem_limit_bytes=vmem_limit),
    )(x_cs, w, gamma2, beta2)

    if L_pad != L:
        out_cs = out_cs[:, :, :L]

    # TODO(synk): fuse this (w,p2)/(h,p1) pixel-shuffle into the kernel's output
    # BlockSpec/stores for shapes with 2W % 128 == 0 (review headline item); the
    # required lane interleave needs Mosaic minor-dim reshape/interleave support,
    # so it is kept as a single XLA transpose here.
    # Channels decompose as (p1, p2, c); output[b, c, d, 2h+p1, 2w+p2].
    y = out_cs.reshape(B, 2, 2, c_out, D, H, W)            # (b, p1, p2, c, d, h, w)
    y = jnp.transpose(y, (0, 3, 4, 5, 1, 6, 2))            # (b, c, d, h, p1, w, p2)
    return y.reshape(B, c_out, D, 2 * H, 2 * W)


def patch_expand_up_reference(x, w_expand, gamma, beta, *, eps=NORM_EPS):
    """Pure-JAX reference matching the PyTorch PatchExpand_Up forward."""
    B, C, D, H, W = x.shape
    L = D * H * W
    xt = jnp.transpose(x.reshape(B, C, L), (0, 2, 1))      # (B, L, C)
    y = jnp.einsum('blc,oc->blo', xt, w_expand,
                   precision=jax.lax.Precision.HIGHEST)    # (B, L, 2C)
    c = (2 * C) // 4
    y = y.reshape(B, D, H, W, 2, 2, c)
    y = jnp.transpose(y, (0, 1, 2, 4, 3, 5, 6)).reshape(B, D, 2 * H, 2 * W, c)
    mean = y.mean(axis=-1, keepdims=True)
    var = ((y - mean) ** 2).mean(axis=-1, keepdims=True)
    y = (y - mean) / jnp.sqrt(var + eps) * gamma + beta
    return jnp.transpose(y, (0, 4, 1, 2, 3))               # (B, c, D, 2H, 2W)


if __name__ == "__main__":
    # Small shapes consistent with the module: dim=64, input_resolution=(2, 8, 8).
    B, dim = 2, 64
    D, H, W = 2, 8, 8
    c_out = dim // 2

    key = jax.random.PRNGKey(0)
    kx, kw, kg, kb = jax.random.split(key, 4)
    x = jax.random.normal(kx, (B, dim, D, H, W), jnp.float32)
    w_expand = jax.random.normal(kw, (2 * dim, dim), jnp.float32) * (dim ** -0.5)
    # Non-trivial LayerNorm affine on purpose.
    gamma = 1.0 + 0.1 * jax.random.normal(kg, (c_out,), jnp.float32)
    beta = 0.1 * jax.random.normal(kb, (c_out,), jnp.float32)

    out = patch_expand_up_pallas(x, w_expand, gamma, beta, input_resolution=(D, H, W))
    out = jax.block_until_ready(out)

    ref = patch_expand_up_reference(x, w_expand, gamma, beta)
    assert out.shape == (B, c_out, D, 2 * H, 2 * W)
    assert jnp.allclose(out, ref, rtol=1e-2, atol=1e-2), (
        "Pallas PatchExpand_Up output mismatch vs pure-JAX reference")

    print("KERNEL_OK")
</pallas_src>

<mosaic_0001>
module attributes {stable_mosaic.version = 11 : i64} {
  func.func @_patch_expand_kernel(%arg0: i32, %arg1: i32, %arg2: memref<1x64x128xf32, #tpu.memory_space<vmem>>, %arg3: memref<128x64xf32, #tpu.memory_space<vmem>>, %arg4: memref<32x1xf32, #tpu.memory_space<vmem>>, %arg5: memref<32x1xf32, #tpu.memory_space<vmem>>, %arg6: memref<1x128x128xf32, #tpu.memory_space<vmem>>) attributes {dimension_semantics = [#tpu.dimension_semantics<parallel>, #tpu.dimension_semantics<parallel>], iteration_bounds = array<i64: 2, 1>, scalar_prefetch = 0 : i64, scratch_operands = 0 : i64, tpu.core_type = #tpu.core_type<tc>, window_params = [{transform_indices = @transform_0, window_bounds = array<i64: 1, 64, 128>}, {pipeline_mode = #tpu.pipeline_mode<synchronous>, transform_indices = @transform_1, window_bounds = array<i64: 128, 64>}, {pipeline_mode = #tpu.pipeline_mode<synchronous>, transform_indices = @transform_2, window_bounds = array<i64: 32, 1>}, {pipeline_mode = #tpu.pipeline_mode<synchronous>, transform_indices = @transform_3, window_bounds = array<i64: 32, 1>}, {transform_indices = @transform_4, window_bounds = array<i64: 1, 128, 128>}]} {
    %c0 = arith.constant 0 : index
    %c0_0 = arith.constant 0 : index
    %c0_1 = arith.constant 0 : index
    %0 = vector.load %arg2[%c0, %c0_0, %c0_1] : memref<1x64x128xf32, #tpu.memory_space<vmem>>, vector<1x64x128xf32>
    %1 = vector.shape_cast %0 : vector<1x64x128xf32> to vector<64x128xf32>
    %c0_2 = arith.constant 0 : index
    %c0_3 = arith.constant 0 : index
    %2 = vector.load %arg3[%c0_2, %c0_3] : memref<128x64xf32, #tpu.memory_space<vmem>>, vector<128x64xf32>
    %cst = arith.constant dense<0.000000e+00> : vector<128x128xf32>
    %3 = tpu.matmul %2, %1, %cst {dimension_numbers = #tpu.dot_dimension_numbers<[1], [0], [0], [1], [0, 0, 1, 1], [], []>} : vector<128x64xf32>, vector<64x128xf32>, vector<128x128xf32> -> vector<128x128xf32>
    %c0_4 = arith.constant 0 : index
    %c0_5 = arith.constant 0 : index
    %4 = vector.load %arg4[%c0_4, %c0_5] : memref<32x1xf32, #tpu.memory_space<vmem>>, vector<32x1xf32>
    %c0_6 = arith.constant 0 : index
    %c0_7 = arith.constant 0 : index
    %5 = vector.load %arg5[%c0_6, %c0_7] : memref<32x1xf32, #tpu.memory_space<vmem>>, vector<32x1xf32>
    %6 = vector.extract_strided_slice %3 {offsets = [0, 0], sizes = [32, 128], strides = [1, 1]} : vector<128x128xf32> to vector<32x128xf32>
    %cst_8 = arith.constant dense<0.000000e+00> : vector<128xf32>
    %7 = vector.multi_reduction <add>, %6, %cst_8 [0] : vector<32x128xf32> to vector<128xf32>
    %8 = vector.shape_cast %7 : vector<128xf32> to vector<1x128xf32>
    %cst_9 = arith.constant 3.200000e+01 : f32
    %9 = vector.broadcast %cst_9 : f32 to vector<1x128xf32>
    %10 = arith.divf %8, %9 : vector<1x128xf32>
    %11 = vector.broadcast %10 : vector<1x128xf32> to vector<32x128xf32>
    %12 = arith.subf %6, %11 : vector<32x128xf32>
    %13 = arith.mulf %12, %12 : vector<32x128xf32>
    %cst_10 = arith.constant dense<0.000000e+00> : vector<128xf32>
    %14 = vector.multi_reduction <add>, %13, %cst_10 [0] : vector<32x128xf32> to vector<128xf32>
    %15 = vector.shape_cast %14 : vector<128xf32> to vector<1x128xf32>
    %cst_11 = arith.constant 3.200000e+01 : f32
    %16 = vector.broadcast %cst_11 : f32 to vector<1x128xf32>
    %17 = arith.divf %15, %16 : vector<1x128xf32>
    %cst_12 = arith.constant 9.99999974E-6 : f32
    %18 = vector.broadcast %cst_12 : f32 to vector<1x128xf32>
    %19 = arith.addf %17, %18 : vector<1x128xf32>
    %20 = math.rsqrt %19 : vector<1x128xf32>
    %21 = vector.broadcast %20 : vector<1x128xf32> to vector<32x128xf32>
    %22 = arith.mulf %12, %21 : vector<32x128xf32>
    %23 = vector.broadcast %4 : vector<32x1xf32> to vector<32x128xf32>
    %24 = arith.mulf %22, %23 : vector<32x128xf32>
    %25 = vector.broadcast %5 : vector<32x1xf32> to vector<32x128xf32>
    %26 = arith.addf %24, %25 : vector<32x128xf32>
    %c0_13 = arith.constant 0 : index
    %c0_14 = arith.constant 0 : index
    %c0_15 = arith.constant 0 : index
    %27 = vector.load %arg6[%c0_13, %c0_14, %c0_15] : memref<1x128x128xf32, #tpu.memory_space<vmem>>, vector<1x32x128xf32>
    %28 = vector.shape_cast %27 : vector<1x32x128xf32> to vector<32x128xf32>
    %29 = vector.shape_cast %26 : vector<32x128xf32> to vector<1x32x128xf32>
    tpu.vector_store %arg6[%c0_13, %c0_14, %c0_15], %29 {strides = array<i32>} : memref<1x128x128xf32, #tpu.memory_space<vmem>>, vector<1x32x128xf32>,
    %30 = vector.extract_strided_slice %3 {offsets = [32, 0], sizes = [32, 128], strides = [1, 1]} : vector<128x128xf32> to vector<32x128xf32>
    %cst_16 = arith.constant dense<0.000000e+00> : vector<128xf32>
    %31 = vector.multi_reduction <add>, %30, %cst_16 [0] : vector<32x128xf32> to vector<128xf32>
    %32 = vector.shape_cast %31 : vector<128xf32> to vector<1x128xf32>
    %cst_17 = arith.constant 3.200000e+01 : f32
    %33 = vector.broadcast %cst_17 : f32 to vector<1x128xf32>
    %34 = arith.divf %32, %33 : vector<1x128xf32>
    %35 = vector.broadcast %34 : vector<1x128xf32> to vector<32x128xf32>
    %36 = arith.subf %30, %35 : vector<32x128xf32>
    %37 = arith.mulf %36, %36 : vector<32x128xf32>
    %cst_18 = arith.constant dense<0.000000e+00> : vector<128xf32>
    %38 = vector.multi_reduction <add>, %37, %cst_18 [0] : vector<32x128xf32> to vector<128xf32>
    %39 = vector.shape_cast %38 : vector<128xf32> to vector<1x128xf32>
    %cst_19 = arith.constant 3.200000e+01 : f32
    %40 = vector.broadcast %cst_19 : f32 to vector<1x128xf32>
    %41 = arith.divf %39, %40 : vector<1x128xf32>
    %cst_20 = arith.constant 9.99999974E-6 : f32
    %42 = vector.broadcast %cst_20 : f32 to vector<1x128xf32>
    %43 = arith.addf %41, %42 : vector<1x128xf32>
    %44 = math.rsqrt %43 : vector<1x128xf32>
    %45 = vector.broadcast %44 : vector<1x128xf32> to vector<32x128xf32>
    %46 = arith.mulf %36, %45 : vector<32x128xf32>
    %47 = vector.broadcast %4 : vector<32x1xf32> to vector<32x128xf32>
    %48 = arith.mulf %46, %47 : vector<32x128xf32>
    %49 = vector.broadcast %5 : vector<32x1xf32> to vector<32x128xf32>
    %50 = arith.addf %48, %49 : vector<32x128xf32>
    %c0_21 = arith.constant 0 : index
    %c32 = arith.constant 32 : index
    %c0_22 = arith.constant 0 : index
    %51 = vector.load %arg6[%c0_21, %c32, %c0_22] : memref<1x128x128xf32, #tpu.memory_space<vmem>>, vector<1x32x128xf32>
    %52 = vector.shape_cast %51 : vector<1x32x128xf32> to vector<32x128xf32>
    %53 = vector.shape_cast %50 : vector<32x128xf32> to vector<1x32x128xf32>
    tpu.vector_store %arg6[%c0_21, %c32, %c0_22], %53 {strides = array<i32>} : memref<1x128x128xf32, #tpu.memory_space<vmem>>, vector<1x32x128xf32>,
    %54 = vector.extract_strided_slice %3 {offsets = [64, 0], sizes = [32, 128], strides = [1, 1]} : vector<128x128xf32> to vector<32x128xf32>
    %cst_23 = arith.constant dense<0.000000e+00> : vector<128xf32>
    %55 = vector.multi_reduction <add>, %54, %cst_23 [0] : vector<32x128xf32> to vector<128xf32>
    %56 = vector.shape_cast %55 : vector<128xf32> to vector<1x128xf32>
    %cst_24 = arith.constant 3.200000e+01 : f32
    %57 = vector.broadcast %cst_24 : f32 to vector<1x128xf32>
    %58 = arith.divf %56, %57 : vector<1x128xf32>
    %59 = vector.broadcast %58 : vector<1x128xf32> to vector<32x128xf32>
    %60 = arith.subf %54, %59 : vector<32x128xf32>
    %61 = arith.mulf %60, %60 : vector<32x128xf32>
    %cst_25 = arith.constant dense<0.000000e+00> : vector<128xf32>
    %62 = vector.multi_reduction <add>, %61, %cst_25 [0] : vector<32x128xf32> to vector<128xf32>
    %63 = vector.shape_cast %62 : vector<128xf32> to vector<1x128xf32>
    %cst_26 = arith.constant 3.200000e+01 : f32
    %64 = vector.broadcast %cst_26 : f32 to vector<1x128xf32>
    %65 = arith.divf %63, %64 : vector<1x128xf32>
    %cst_27 = arith.constant 9.99999974E-6 : f32
    %66 = vector.broadcast %cst_27 : f32 to vector<1x128xf32>
    %67 = arith.addf %65, %66 : vector<1x128xf32>
    %68 = math.rsqrt %67 : vector<1x128xf32>
    %69 = vector.broadcast %68 : vector<1x128xf32> to vector<32x128xf32>
    %70 = arith.mulf %60, %69 : vector<32x128xf32>
    %71 = vector.broadcast %4 : vector<32x1xf32> to vector<32x128xf32>
    %72 = arith.mulf %70, %71 : vector<32x128xf32>
    %73 = vector.broadcast %5 : vector<32x1xf32> to vector<32x128xf32>
    %74 = arith.addf %72, %73 : vector<32x128xf32>
    %c0_28 = arith.constant 0 : index
    %c64 = arith.constant 64 : index
    %c0_29 = arith.constant 0 : index
    %75 = vector.load %arg6[%c0_28, %c64, %c0_29] : memref<1x128x128xf32, #tpu.memory_space<vmem>>, vector<1x32x128xf32>
    %76 = vector.shape_cast %75 : vector<1x32x128xf32> to vector<32x128xf32>
    %77 = vector.shape_cast %74 : vector<32x128xf32> to vector<1x32x128xf32>
    tpu.vector_store %arg6[%c0_28, %c64, %c0_29], %77 {strides = array<i32>} : memref<1x128x128xf32, #tpu.memory_space<vmem>>, vector<1x32x128xf32>,
    %78 = vector.extract_strided_slice %3 {offsets = [96, 0], sizes = [32, 128], strides = [1, 1]} : vector<128x128xf32> to vector<32x128xf32>
    %cst_30 = arith.constant dense<0.000000e+00> : vector<128xf32>
    %79 = vector.multi_reduction <add>, %78, %cst_30 [0] : vector<32x128xf32> to vector<128xf32>
    %80 = vector.shape_cast %79 : vector<128xf32> to vector<1x128xf32>
    %cst_31 = arith.constant 3.200000e+01 : f32
    %81 = vector.broadcast %cst_31 : f32 to vector<1x128xf32>
    %82 = arith.divf %80, %81 : vector<1x128xf32>
    %83 = vector.broadcast %82 : vector<1x128xf32> to vector<32x128xf32>
    %84 = arith.subf %78, %83 : vector<32x128xf32>
    %85 = arith.mulf %84, %84 : vector<32x128xf32>
    %cst_32 = arith.constant dense<0.000000e+00> : vector<128xf32>
    %86 = vector.multi_reduction <add>, %85, %cst_32 [0] : vector<32x128xf32> to vector<128xf32>
    %87 = vector.shape_cast %86 : vector<128xf32> to vector<1x128xf32>
    %cst_33 = arith.constant 3.200000e+01 : f32
    %88 = vector.broadcast %cst_33 : f32 to vector<1x128xf32>
    %89 = arith.divf %87, %88 : vector<1x128xf32>
    %cst_34 = arith.constant 9.99999974E-6 : f32
    %90 = vector.broadcast %cst_34 : f32 to vector<1x128xf32>
    %91 = arith.addf %89, %90 : vector<1x128xf32>
    %92 = math.rsqrt %91 : vector<1x128xf32>
    %93 = vector.broadcast %92 : vector<1x128xf32> to vector<32x128xf32>
    %94 = arith.mulf %84, %93 : vector<32x128xf32>
    %95 = vector.broadcast %4 : vector<32x1xf32> to vector<32x128xf32>
    %96 = arith.mulf %94, %95 : vector<32x128xf32>
    %97 = vector.broadcast %5 : vector<32x1xf32> to vector<32x128xf32>
    %98 = arith.addf %96, %97 : vector<32x128xf32>
    %c0_35 = arith.constant 0 : index
    %c96 = arith.constant 96 : index
    %c0_36 = arith.constant 0 : index
    %99 = vector.load %arg6[%c0_35, %c96, %c0_36] : memref<1x128x128xf32, #tpu.memory_space<vmem>>, vector<1x32x128xf32>
    %100 = vector.shape_cast %99 : vector<1x32x128xf32> to vector<32x128xf32>
    %101 = vector.shape_cast %98 : vector<32x128xf32> to vector<1x32x128xf32>
    tpu.vector_store %arg6[%c0_35, %c96, %c0_36], %101 {strides = array<i32>} : memref<1x128x128xf32, #tpu.memory_space<vmem>>, vector<1x32x128xf32>,
    return
  }
  func.func @transform_0(%arg0: i32, %arg1: i32) -> (i32, i32, i32) {
    %c0_i32 = arith.constant 0 : i32
    %c0_i32_0 = arith.constant 0 : i32
    return %arg0, %c0_i32, %arg1 : i32, i32, i32
  }
  func.func @transform_1(%arg0: i32, %arg1: i32) -> (i32, i32) {
    %c0_i32 = arith.constant 0 : i32
    %c0_i32_0 = arith.constant 0 : i32
    %c0_i32_1 = arith.constant 0 : i32
    return %c0_i32, %c0_i32_0 : i32, i32
  }
  func.func @transform_2(%arg0: i32, %arg1: i32) -> (i32, i32) {
    %c0_i32 = arith.constant 0 : i32
    %c0_i32_0 = arith.constant 0 : i32
    %c0_i32_1 = arith.constant 0 : i32
    return %c0_i32, %c0_i32_0 : i32, i32
  }
  func.func @transform_3(%arg0: i32, %arg1: i32) -> (i32, i32) {
    %c0_i32 = arith.constant 0 : i32
    %c0_i32_0 = arith.constant 0 : i32
    %c0_i32_1 = arith.constant 0 : i32
    return %c0_i32, %c0_i32_0 : i32, i32
  }
  func.func @transform_4(%arg0: i32, %arg1: i32) -> (i32, i32, i32) {
    %c0_i32 = arith.constant 0 : i32
    %c0_i32_0 = arith.constant 0 : i32
    return %arg0, %c0_i32, %arg1 : i32, i32, i32
  }
}

</mosaic_0001>

<bundles_post_ra>
// kernel: tpu_custom_call.1
= control target key start
LH: loop header
LB: loop body
LE: loop exit
PB: predicated region body
PF: predicated region fallthrough
CT: control target
= control target key end

     0   :  { %9 = vsyncpa [#allocation3], 0  ;;  %s1344_s0 = inlined_call_operand.vmem [shape: f32[2,64,128], index: 0, kind: input, shape index: {}]   ;;  %s1345_s1 = inlined_call_operand.vmem [shape: f32[128,64], index: 1, kind: input, shape index: {}]   ;;  %s1346_s2 = inlined_call_operand.vmem [shape: f32[32,1], index: 2, kind: input, shape index: {}]   ;;  %s1347_s3 = inlined_call_operand.vmem [shape: f32[32,1], index: 3, kind: input, shape index: {}]   ;;  %s1348_s4 = inlined_call_operand.hbm [shape: f32[2,128,128], index: 4, kind: output, shape index: {}]  }
   0x1   :  { %11 = vsyncpa [#allocation3 + $0x1], 0  ;;  %s965_s15 = smov 0   ;;  %s967_s16 = smov 0  }
   0x2   :  { %s969_s17 = smov 0   ;;  %s971_s18 = smov 0  }
   0x3   :  { %s973_s19 = smov 0   ;;  %s975_s20 = smov 0  }
   0x4 LB: > { %s729_s21 = sadd.s32 4294967295, %s934_s20   ;;  %s730_s22 = sadd.s32 4294967294, %s934_s20   ;;  %s934_s20 = sphi %s975_s20, %s17_s20   ;;  %s930_s19 = sphi %s973_s19, %s1355_s19   ;;  %s926_s18 = sphi %s971_s18, %s1354_s18   ;;  %s922_s17 = sphi %s969_s17, %s1353_s17   ;;  %s918_s16 = sphi %s967_s16, %s1352_s16   ;;  %s914_s15 = sphi %s965_s15, %s1351_s15  }
   0x5   : > { %s29_s23 = sadd.s32 1, %s930_s19  ;;  %s129_s24 = sadd.s32 1, %s922_s17 }
   0x6   : > { %p31_p0 = scmp.ge.s32.totalorder %s29_s23, 2  ;;  %p139_p1 = scmp.ne.s32.totalorder %s922_s17, %s918_s16 }
   0x7   : > { %p140_p2 = scmp.eq.s32.totalorder %s729_s21, 1  ;;  %p145_p3 = scmp.ne.s32.totalorder %s918_s16, %s914_s15 }
   0x8   : > { %s1357_s23 = smov (%p31_p0, %s29_s23), 0  ;;  %p146_p5 = scmp.eq.s32.totalorder %s730_s22, 1 }
   0x9   : > { %p1005_p4 = por %p140_p2, %p139_p1  ;;  %s124_s26 = ssub.s32 %s930_s19, %s1357_s23 }
   0xa   : > { %p733_p6 = scmp.ge.s32.totalorder %s934_s20, 1  ;;  %p127_p7 = scmp.eq.s32.totalorder %s124_s26, 0 }
   0xb   : > { %p1012_p8 = por %p146_p5, %p145_p3  ;;  %p184_p9 = scmp.lt.s32.totalorder %s934_s20, 3 }
   0xc   : > { %s1018_s28 = scalar_select %p127_p7, %s922_s17, %s129_s24  }
   0xd   : > { %p185_p10 = pnand %p733_p6, %p184_p9 }
   0xe   : > { %p213_p11 = scmp.lt.s32.totalorder (!%p185_p10), %s926_s18, 1  ;;  %s210_s8 = sand.u32 (!%p185_p10), 1, %s918_s16  }
   0xf   : > { %188 = sbr.rel (%p185_p10) target bundleno = 278 (0x116), region = 36  ;;  %s734_s9 = sshll.u32 (!%p185_p10), %s210_s8, 7 }
  0x10   : > { %s1260_s10 = scalar_lea.vmem (!%p185_p10), [#allocation2], %s734_s9  ;;  %s759_s11 = sshll.u32 (!%p185_p10), %s926_s18, 7 }
  0x11   : > { %s647_s13 = scalar_lea.hbm (!%p185_p10), %s1348_s4, %s759_s11  ;;  %s648_s14 = sshll.u32 (!%p185_p10), %s1260_s10, 4  ;;  %s649_s14 = int_to_ptr.vmem [resolvable:$true] %s648_s14 }
  0x12   : > { %s650_s21 = sshll.u32 (!%p185_p10), %s647_s13, 4  ;;  %s635_s22 = scalar_lea.sflag (!%p185_p10), [#allocation3], %s210_s8  ;;  %s651_s21 = int_to_ptr.hbm [resolvable:$true] %s650_s21 }
  0x13   : > { %s870_s24 = sshra.s32 (!%p185_p10), %s651_s21, 4  ;;  %s876_s5 = scalar_lea.hbm (!%p185_p10), %s1348_s4, 256  ;;  %s871_s24 = int_to_ptr.hbm [resolvable:$true] %s870_s24 }
  0x14   : > { %s214_s29 = scalar_select %p213_p11, %s926_s18, 1  ;;  %v229_v8 = vld [vmem:[%s1345_s1] sm:$0xff]  ;;  %vm245_vm0 = vcmask 523264   ;;  %v361_v12 = vld [vmem:[%s1346_s2 + $0x10] sm:$0xff]  ;;  %v936_v14 = vmov 0   ;;  %v230_v16 = vld [vmem:[%s1345_s1 + $0x8] sm:$0xff] }
  0x15   : > { %v233_v9 = vld [vmem:[%s1345_s1 + $0x20] sm:$0xff]  ;;  %844 = vset.pattern.permute.xlu1 %v936_v14  ;;  %843 = vset.pattern.permute.xlu0 %v936_v14  ;;  %v234_v17 = vld [vmem:[%s1345_s1 + $0x28] sm:$0xff]  ;;  %v362_v20 = vld [vmem:[%s1346_s2 + $0x18] sm:$0xff]  ;;  %v937_v39 = vmov 32.0   ;;  %s872_s26 = scalar_lea.hbm %s871_s24, 128  ;;  %p877_p1 = scmp.lt.s32.totalorder %s871_s24, %s1348_s4 }
  0x16   : > { %s758_s30 = sshll.u32 %s214_s29, 6  ;;  %v237_v10 = vld [vmem:[%s1345_s1 + $0x40] sm:$0xff]  ;;  %429 = vperm.xlu1 %844, %v361_v12   ;;  %845 = vset.pattern.permute.xlu2 %v936_v14  ;;  %v238_v18 = vld [vmem:[%s1345_s1 + $0x48] sm:$0xff]  ;;  %v231_v23 = vld [vmem:[%s1345_s1 + $0x10] sm:$0xff]  ;;  %846 = vrcp.f32 %v937_v39  ;;  %p873_p12 = scmp.ne.s32.totalorder %s871_s24, %s872_s26 }
  0x17   : > { %s1025_s7 = scalar_lea.vmem %s1344_s0, %s758_s30  ;;  %v241_v11 = vld [vmem:[%s1345_s1 + $0x60] sm:$0xff]  ;;  %v242_v19 = vld [vmem:[%s1345_s1 + $0x68] sm:$0xff]  ;;  %v235_v24 = vld [vmem:[%s1345_s1 + $0x30] sm:$0xff]  ;;  %p878_p2 = scmp.lt.s32.totalorder %s876_s5, %s872_s26 }
  0x18   : > { %v228_v0 = vld [vmem:[%s1025_s7 + $0x38] sm:$0xff]  ;;  %v227_v1 = vld [vmem:[%s1025_s7 + $0x30] sm:$0xff]  ;;  %v226_v2 = vld [vmem:[%s1025_s7 + $0x28] sm:$0xff]  ;;  %p874_p13 = pnand %p873_p12, %p1005_p4 }
  0x19   : > { %302 = vmatpush.msra.mxu0 %v228_v0  ;;  %760 = vmatpush.msra.mxu1 %v228_v0  ;;  %v225_v3 = vld [vmem:[%s1025_s7 + $0x20] sm:$0xff]  ;;  %v224_v4 = vld [vmem:[%s1025_s7 + $0x18] sm:$0xff]  ;;  %v223_v5 = vld [vmem:[%s1025_s7 + $0x10] sm:$0xff]  ;;  %p879_p3 = por %p878_p2, %p877_p1 }
  0x1a   : > { %761 = vmatpush.msra.mxu2 %v228_v0  ;;  %762 = vmatpush.msra.mxu3 %v228_v0  ;;  %v222_v6 = vld [vmem:[%s1025_s7 + $0x8] sm:$0xff]  ;;  %v221_v7 = vld [vmem:[%s1025_s7] sm:$0xff]  ;;  %v239_v25 = vld [vmem:[%s1345_s1 + $0x50] sm:$0xff]  ;;  %p875_p0 = pneg %p874_p13 }
  0x1b   : > { %303 = vmatpush.msra.mxu0 %v227_v1  ;;  %763 = vmatpush.msra.mxu1 %v227_v1  ;;  %v359_v13 = vld [vmem:[%s1346_s2] sm:$0xff]  ;;  %v360_v21 = vld [vmem:[%s1346_s2 + $0x8] sm:$0xff]  ;;  %v243_v26 = vld [vmem:[%s1345_s1 + $0x70] sm:$0xff] }
  0x1c   : > { %764 = vmatpush.msra.mxu2 %v227_v1  ;;  %765 = vmatpush.msra.mxu3 %v227_v1  ;;  %v363_v15 = vld [vmem:[%s1347_s3] sm:$0xff]  ;;  %v364_v22 = vld [vmem:[%s1347_s3 + $0x8] sm:$0xff]  ;;  %v366_v27 = vld [vmem:[%s1347_s3 + $0x18] sm:$0xff]  ;;  %v847_v44 = vpop.eup %846  ;;  %p880_p5 = pnand %p879_p3, %p875_p0 }
  0x1d   : > { %304 = vmatpush.msra.mxu0 %v226_v2  ;;  %766 = vmatpush.msra.mxu1 %v226_v2  ;;  %v365_v28 = vld [vmem:[%s1347_s3 + $0x10] sm:$0xff]  ;;  %v232_v29 = vld [vmem:[%s1345_s1 + $0x18] sm:$0xff]  ;;  %v377_v45 = vmul.f32 32.0, %v847_v44  ;;  %vm381_vm1 = vweird.f32 %v847_v44 }
  0x1e   : > { %767 = vmatpush.msra.mxu2 %v226_v2  ;;  %768 = vmatpush.msra.mxu3 %v226_v2  ;;  %v236_v30 = vld [vmem:[%s1345_s1 + $0x38] sm:$0xff] }
  0x1f   : > { %305 = vmatpush.msra.mxu0 %v225_v3  ;;  %769 = vmatpush.msra.mxu1 %v225_v3  ;;  %v240_v31 = vld [vmem:[%s1345_s1 + $0x58] sm:$0xff]  ;;  %v378_v53 = vsub.f32 1.0, %v377_v45 }
  0x20   : > { %770 = vmatpush.msra.mxu2 %v225_v3  ;;  %771 = vmatpush.msra.mxu3 %v225_v3  ;;  %v244_v32 = vld [vmem:[%s1345_s1 + $0x78] sm:$0xff] }
  0x21   : > { %306 = vmatpush.msra.mxu0 %v224_v4  ;;  %772 = vmatpush.msra.mxu1 %v224_v4  ;;  %v379_v61 = vmul.f32 %v847_v44, %v378_v53 }
  0x22   : > { %773 = vmatpush.msra.mxu2 %v224_v4  ;;  %774 = vmatpush.msra.mxu3 %v224_v4 }
  0x23   : > { %307 = vmatpush.msra.mxu0 %v223_v5  ;;  %775 = vmatpush.msra.mxu1 %v223_v5 }
  0x24   : > { %776 = vmatpush.msra.mxu2 %v223_v5  ;;  %777 = vmatpush.msra.mxu3 %v223_v5 }
  0x25   : > { %308 = vmatpush.msra.mxu0 %v222_v6  ;;  %778 = vmatpush.msra.mxu1 %v222_v6 }
  0x26   : > { %779 = vmatpush.msra.mxu2 %v222_v6  ;;  %780 = vmatpush.msra.mxu3 %v222_v6  ;;  %v380_v6 = vadd.f32 %v847_v44, %v379_v61 }
  0x27   : > { %309 = vmatpush.msra.mxu0 %v221_v7  ;;  %781 = vmatpush.msra.mxu1 %v221_v7 }
  0x28   : > { %782 = vmatpush.msra.mxu2 %v221_v7  ;;  %783 = vmatpush.msra.mxu3 %v221_v7 }
  0x29   : > { %737 = vmatmul.msk.f32.vlgmr.msra.gmra.mxu0 %vm245_vm0, %v229_v8  ;;  %741 = vmatmul.msk.f32.vlgmr.msra.gmra.mxu1 %vm245_vm0, %v233_v9 }
  0x2a   : > { %745 = vmatmul.msk.f32.vlgmr.msra.gmra.mxu2 %vm245_vm0, %v237_v10  ;;  %749 = vmatmul.msk.f32.vlgmr.msra.gmra.mxu3 %vm245_vm0, %v241_v11 }
  0x2b   : > { %419 = vperm.xlu0 %843, %v359_v13   ;;  %443 = vperm.xlu2 %845, %v363_v15   ;;  %v1144_v15 = vsel %vm381_vm1, %v847_v44, %v380_v6 }
  0x2c   : > { %434 = vperm.xlu1 %844, %v362_v20  }
  0x31   : > { %738 = vmatmul.msk.f32.gmra.mxu0 %vm245_vm0, %v230_v16  ;;  %742 = vmatmul.msk.f32.gmra.mxu1 %vm245_vm0, %v234_v17 }
  0x32   : > { %746 = vmatmul.msk.f32.gmra.mxu2 %vm245_vm0, %v238_v18  ;;  %750 = vmatmul.msk.f32.gmra.mxu3 %vm245_vm0, %v242_v19 }
  0x33   : > { %424 = vperm.xlu0 %843, %v360_v21   ;;  %448 = vperm.xlu2 %845, %v364_v22  }
  0x34   : > { %458 = vperm.xlu1 %844, %v366_v27  }
  0x39   : > { %739 = vmatmul.msk.f32.gmra.mxu0 %vm245_vm0, %v231_v23  ;;  %743 = vmatmul.msk.f32.gmra.mxu1 %vm245_vm0, %v235_v24 }
  0x3a   : > { %747 = vmatmul.msk.f32.gmra.mxu2 %vm245_vm0, %v239_v25  ;;  %751 = vmatmul.msk.f32.gmra.mxu3 %vm245_vm0, %v243_v26 }
  0x3b   : > { %453 = vperm.xlu0 %843, %v365_v28  }
  0x41   : > { %740 = vmatmul.msk.f32.gmra.mxu0 %vm245_vm0, %v232_v29  ;;  %744 = vmatmul.msk.f32.gmra.mxu1 %vm245_vm0, %v236_v30 }
  0x42   : > { %748 = vmatmul.msk.f32.gmra.mxu2 %vm245_vm0, %v240_v31  ;;  %752 = vmatmul.msk.f32.gmra.mxu3 %vm245_vm0, %v244_v32 }
  0xa6   : > { %v311_v33 = vpop.f32.mrf.mxu0  ;;  %v323_v34 = vpop.f32.mrf.mxu1 }
  0xad   : > { %v1123_v35 = vpop.f32.mrf.mxu2  ;;  %v1125_v36 = vpop.f32.mrf.mxu3 }
  0xae   : > { %v314_v37 = vpop.f32.mrf.mxu0  ;;  %v326_v38 = vpop.f32.mrf.mxu1 }
  0xaf   : > { %v367_v46 = vadd.f32 %v314_v37, %v311_v33  ;;  %v469_v47 = vadd.f32 %v326_v38, %v323_v34 }
  0xb5   : > { %v1127_v40 = vpop.f32.mrf.mxu2  ;;  %v1129_v41 = vpop.f32.mrf.mxu3 }
  0xb6   : > { %v317_v42 = vpop.f32.mrf.mxu0  ;;  %v329_v43 = vpop.f32.mrf.mxu1  ;;  %v524_v59 = vadd.f32 %v1127_v40, %v1123_v35  ;;  %v579_v60 = vadd.f32 %v1129_v41, %v1125_v36 }
  0xb7   : > { %v368_v48 = vadd.f32 %v367_v46, %v317_v42  ;;  %v470_v49 = vadd.f32 %v469_v47, %v329_v43 }
  0xbd   : > { %v1131_v50 = vpop.f32.mrf.mxu2  ;;  %v1133_v51 = vpop.f32.mrf.mxu3 }
  0xbe   : > { %v320_v52 = vpop.f32.mrf.mxu0  ;;  %v332_v54 = vpop.f32.mrf.mxu1  ;;  %v525_v0 = vadd.f32 %v524_v59, %v1131_v50  ;;  %v580_v1 = vadd.f32 %v579_v60, %v1133_v51 }
  0xbf   : > { %v369_v55 = vadd.f32 %v368_v48, %v320_v52  ;;  %v471_v56 = vadd.f32 %v470_v49, %v332_v54 }
  0xc1   : > { %v370_v57 = vrot.slane %v369_v55, 4  ;;  %v472_v58 = vrot.slane %v471_v56, 4 }
  0xc3   : > { %v371_v62 = vadd.f32 %v370_v57, %v369_v55  ;;  %v473_v63 = vadd.f32 %v472_v58, %v471_v56 }
  0xc5   : > { %v372_v2 = vrot.slane %v371_v62, 2  ;;  %v474_v3 = vrot.slane %v473_v63, 2  ;;  %v344_v4 = vpop.f32.mrf.mxu2  ;;  %v1141_v5 = vpop.f32.mrf.mxu3 }
  0xc6   : > { %v526_v7 = vadd.f32 %v525_v0, %v344_v4  ;;  %v581_v8 = vadd.f32 %v580_v1, %v1141_v5 }
  0xc7   : > { %v373_v9 = vadd.f32 %v372_v2, %v371_v62  ;;  %v475_v10 = vadd.f32 %v474_v3, %v473_v63 }
  0xc8   : > { %v527_v11 = vrot.slane %v526_v7, 4  ;;  %v582_v12 = vrot.slane %v581_v8, 4 }
  0xc9   : > { %v374_v13 = vrot.slane %v373_v9, 1  ;;  %v476_v14 = vrot.slane %v475_v10, 1 }
  0xca   : > { %v528_v16 = vadd.f32 %v527_v11, %v526_v7  ;;  %v583_v17 = vadd.f32 %v582_v12, %v581_v8 }
  0xcb   : > { %v375_v18 = vadd.f32 %v374_v13, %v373_v9  ;;  %v477_v19 = vadd.f32 %v476_v14, %v475_v10 }
  0xcc   : > { %v529_v20 = vrot.slane %v528_v16, 2  ;;  %v584_v21 = vrot.slane %v583_v17, 2 }
  0xcd   : > { %v383_v22 = vmul.f32 %v1144_v15, %v375_v18  ;;  %v478_v23 = vmul.f32 %v477_v19, %v1144_v15 }
  0xce   : > { %v530_v24 = vadd.f32 %v529_v20, %v528_v16  ;;  %v585_v28 = vadd.f32 %v584_v21, %v583_v17 }
  0xcf   : > { %v1148_v25 = vsub.f32 %v311_v33, %v383_v22  ;;  %v1150_v26 = vsub.f32 %v314_v37, %v383_v22  ;;  %v1152_v27 = vsub.f32 %v317_v42, %v383_v22  ;;  %v1154_v29 = vsub.f32 %v323_v34, %v478_v23 }
  0xd0   : > { %v1156_v30 = vsub.f32 %v326_v38, %v478_v23  ;;  %v1158_v31 = vsub.f32 %v329_v43, %v478_v23  ;;  %v1160_v32 = vsub.f32 %v320_v52, %v383_v22  ;;  %v1166_v44 = vsub.f32 %v332_v54, %v478_v23 }
  0xd1   : > { %v388_v39 = vmul.f32 %v1148_v25, %v1148_v25  ;;  %v389_v33 = vmul.f32 %v1150_v26, %v1150_v26  ;;  %v483_v37 = vmul.f32 %v1154_v29, %v1154_v29  ;;  %v390_v38 = vmul.f32 %v1152_v27, %v1152_v27 }
  0xd2   : > { %v484_v34 = vmul.f32 %v1156_v30, %v1156_v30  ;;  %v531_v43 = vrot.slane %v530_v24, 1  ;;  %v586_v45 = vrot.slane %v585_v28, 1  ;;  %v485_v46 = vmul.f32 %v1158_v31, %v1158_v31 }
  0xd3   : > { %v392_v42 = vadd.f32 %v389_v33, %v388_v39  ;;  %v391_v48 = vmul.f32 %v1160_v32, %v1160_v32  ;;  %v486_v54 = vmul.f32 %v1166_v44, %v1166_v44 }
  0xd4   : > { %v487_v47 = vadd.f32 %v484_v34, %v483_v37  ;;  %v532_v52 = vadd.f32 %v531_v43, %v530_v24  ;;  %v587_v53 = vadd.f32 %v586_v45, %v585_v28 }
  0xd5   : > { %v393_v49 = vadd.f32 %v392_v42, %v390_v38 }
  0xd6   : > { %v488_v55 = vadd.f32 %v487_v47, %v485_v46  ;;  %v533_v57 = vmul.f32 %v532_v52, %v1144_v15  ;;  %v588_v58 = vmul.f32 %v587_v53, %v1144_v15  ;;  %v1225_v53 = vpop.permute.xlu0 %419 }
  0xd7   : > { %v394_v56 = vadd.f32 %v393_v49, %v391_v48  ;;  %v1223_v48 = vpop.permute.xlu1 %429 }
  0xd8   : > { %v489_v59 = vadd.f32 %v488_v55, %v486_v54  ;;  %v1183_v61 = vsub.f32 %v1123_v35, %v533_v57  ;;  %v1186_v62 = vsub.f32 %v1127_v40, %v533_v57  ;;  %v1189_v63 = vsub.f32 %v1131_v50, %v533_v57 }
  0xd9   : > { %v395_v60 = vrot.slane %v394_v56, 4  ;;  %v1191_v1 = vsub.f32 %v344_v4, %v533_v57  ;;  %v1194_v2 = vsub.f32 %v1125_v36, %v588_v58  ;;  %v1197_v3 = vsub.f32 %v1129_v41, %v588_v58 }
  0xda   : > { %v490_v0 = vrot.slane %v489_v59, 4  ;;  %v538_v35 = vmul.f32 %v1183_v61, %v1183_v61  ;;  %v539_v40 = vmul.f32 %v1186_v62, %v1186_v62  ;;  %v540_v50 = vmul.f32 %v1189_v63, %v1189_v63 }
  0xdb   : > { %v396_v6 = vadd.f32 %v395_v60, %v394_v56  ;;  %v1206_v4 = vsub.f32 %v1133_v51, %v588_v58  ;;  %v1209_v36 = vsub.f32 %v1141_v5, %v588_v58  ;;  %v593_v9 = vmul.f32 %v1194_v2, %v1194_v2 }
  0xdc   : > { %v491_v7 = vadd.f32 %v490_v0, %v489_v59  ;;  %v542_v41 = vadd.f32 %v539_v40, %v538_v35  ;;  %v594_v10 = vmul.f32 %v1197_v3, %v1197_v3  ;;  %v541_v12 = vmul.f32 %v1191_v1, %v1191_v1 }
  0xdd   : > { %v397_v8 = vrot.slane %v396_v6, 2  ;;  %v595_v51 = vmul.f32 %v1206_v4, %v1206_v4  ;;  %v596_v19 = vmul.f32 %v1209_v36, %v1209_v36 }
  0xde   : > { %v492_v11 = vrot.slane %v491_v7, 2  ;;  %v543_v14 = vadd.f32 %v542_v41, %v540_v50  ;;  %v597_v16 = vadd.f32 %v594_v10, %v593_v9 }
  0xdf   : > { %v398_v13 = vadd.f32 %v397_v8, %v396_v6  ;;  %v1234_v41 = vpop.permute.xlu1 %434 }
  0xe0   : > { %v493_v5 = vadd.f32 %v492_v11, %v491_v7  ;;  %v544_v18 = vadd.f32 %v543_v14, %v541_v12  ;;  %v598_v20 = vadd.f32 %v597_v16, %v595_v51  ;;  %v1237_v11 = vpop.permute.xlu0 %424 }
  0xe1   : > { %v399_v17 = vrot.slane %v398_v13, 1 }
  0xe2   : > { %v494_v21 = vrot.slane %v493_v5, 1  ;;  %v545_v23 = vrot.slane %v544_v18, 4  ;;  %v599_v24 = vadd.f32 %v598_v20, %v596_v19 }
  0xe3   : > { %v400_v22 = vadd.f32 %v399_v17, %v398_v13 }
  0xe4   : > { %v495_v28 = vadd.f32 %v494_v21, %v493_v5  ;;  %v546_v33 = vadd.f32 %v545_v23, %v544_v18  ;;  %v600_v37 = vrot.slane %v599_v24, 4  ;;  %v1241_v5 = vpop.permute.xlu2 %443 }
  0xe5   : > { %v401_v39 = vmul.f32 %v400_v22, %v1144_v15 }
  0xe6   : > { %v496_v34 = vmul.f32 %v495_v28, %v1144_v15  ;;  %v547_v42 = vrot.slane %v546_v33, 2  ;;  %v601_v43 = vadd.f32 %v600_v37, %v599_v24 }
  0xe7   : > { %v402_v38 = vadd.f32 1e-05, %v401_v39 }
  0xe8   : > { %v497_v45 = vadd.f32 1e-05, %v496_v34  ;;  %v548_v46 = vadd.f32 %v547_v42, %v546_v33  ;;  %v602_v47 = vrot.slane %v601_v43, 2  ;;  %v459_v34 = vpop.permute.xlu1 %458 }
  0xe9   : > { %848 = vrsqrt.f32 %v402_v38  ;;  %vm409_vm4 = vweird.f32 %v402_v38 }
  0xea   : > { %850 = vrsqrt.f32 %v497_v45  ;;  %v549_v49 = vrot.slane %v548_v46, 1  ;;  %v603_v52 = vadd.f32 %v602_v47, %v601_v43  ;;  %vm504_vm6 = vweird.f32 %v497_v45  ;;  %v454_v47 = vpop.permute.xlu0 %453 }
  0xec   : > { %v550_v54 = vadd.f32 %v549_v49, %v548_v46  ;;  %v604_v55 = vrot.slane %v603_v52, 1 }
  0xee   : > { %v551_v57 = vmul.f32 %v550_v54, %v1144_v15  ;;  %v605_v58 = vadd.f32 %v604_v55, %v603_v52 }
  0xef   : > { %v849_v56 = vpop.eup %848 }
  0xf0   : > { %v851_v59 = vpop.eup %850  ;;  %v404_v60 = vmul.f32 %v849_v56, %v402_v38  ;;  %v1228_v6 = vadd.f32 1e-05, %v551_v57  ;;  %v606_v35 = vmul.f32 %v605_v58, %v1144_v15  ;;  %vm410_vm2 = vweird.f32 %v849_v56 }
  0xf1   : > { %v499_v0 = vmul.f32 %v851_v59, %v497_v45  ;;  %vm505_vm3 = vweird.f32 %v851_v59  ;;  %vm411_vm5 = vmor %vm409_vm4, %vm410_vm2 }
  0xf2   : > { %v405_v40 = vmul.f32 %v849_v56, %v404_v60  ;;  %852 = vrsqrt.f32 %v1228_v6  ;;  %v1232_v50 = vadd.f32 1e-05, %v606_v35  ;;  %vm506_vm7 = vmor %vm504_vm6, %vm505_vm3  ;;  %vm559_vm8 = vweird.f32 %v1228_v6 }
  0xf3   : > { %v500_v7 = vmul.f32 %v851_v59, %v499_v0 }
  0xf4   : > { %v406_v8 = vmul.f32 0.5, %v405_v40  ;;  %854 = vrsqrt.f32 %v1232_v50  ;;  %vm614_vm12 = vweird.f32 %v1232_v50 }
  0xf5   : > { %v501_v9 = vmul.f32 0.5, %v500_v7 }
  0xf6   : > { %v407_v10 = vsub.f32 1.5, %v406_v8 }
  0xf7   : > { %v502_v12 = vsub.f32 1.5, %v501_v9 }
  0xf8   : > { %v408_v15 = vmul.f32 %v849_v56, %v407_v10  ;;  %v853_v13 = vpop.eup %852 }
  0xf9   : > { %v503_v14 = vmul.f32 %v851_v59, %v502_v12  ;;  %v554_v16 = vmul.f32 %v853_v13, %v1228_v6  ;;  %vm560_vm9 = vweird.f32 %v853_v13 }
  0xfa   : > { %v412_v51 = vsel %vm411_vm5, %v849_v56, %v408_v15  ;;  %v855_v17 = vpop.eup %854  ;;  %vm561_vm11 = vmor %vm559_vm8, %vm560_vm9 }
  0xfb   : > { %v416_v18 = vmul.f32 %v412_v51, %v1160_v32  ;;  %v507_v19 = vsel %vm506_vm7, %v851_v59, %v503_v14  ;;  %v413_v20 = vmul.f32 %v412_v51, %v1148_v25  ;;  %v415_v21 = vmul.f32 %v412_v51, %v1152_v27 }
  0xfc   : > { %v511_v22 = vmul.f32 %v507_v19, %v1166_v44  ;;  %v555_v23 = vmul.f32 %v853_v13, %v554_v16  ;;  %v609_v24 = vmul.f32 %v855_v17, %v1232_v50  ;;  %v508_v39 = vmul.f32 %v507_v19, %v1154_v29 }
  0xfd   : > { %v437_v28 = vmul.f32 %v1225_v53, %v413_v20  ;;  %v440_v32 = vmul.f32 %v1234_v41, %v416_v18  ;;  %v439_v33 = vmul.f32 %v1223_v48, %v415_v21  ;;  %v510_v44 = vmul.f32 %v507_v19, %v1158_v31 }
  0xfe   : > { %v556_v25 = vmul.f32 0.5, %v555_v23  ;;  %v610_v37 = vmul.f32 %v855_v17, %v609_v24  ;;  %v515_v27 = vmul.f32 %v511_v22, %v1234_v41  ;;  %v512_v38 = vmul.f32 %v508_v39, %v1225_v53 }
  0xff   : > { %v461_v42 = vadd.f32 %v1241_v5, %v437_v28  ;;  %v464_v43 = vadd.f32 %v459_v34, %v440_v32  ;;  %v514_v49 = vmul.f32 %v510_v44, %v1223_v48  ;;  %v463_v52 = vadd.f32 %v454_v47, %v439_v33 }
 0x100   : > { %v557_v45 = vsub.f32 1.5, %v556_v25  ;;  %v611_v46 = vmul.f32 0.5, %v610_v37  ;;  %v519_v29 = vadd.f32 %v515_v27, %v459_v34  ;;  %v516_v31 = vadd.f32 %v512_v38, %v1241_v5 }
 0x101   : > { %465 = vst [vmem:[%s1260_s10] sm:$0xff] %v461_v42  ;;  %v414_v54 = vmul.f32 %v412_v51, %v1150_v26  ;;  %v509_v55 = vmul.f32 %v507_v19, %v1156_v30  ;;  %vm615_vm10 = vweird.f32 %v855_v17  ;;  %v518_v58 = vadd.f32 %v514_v49, %v454_v47  ;;  %v449_v30 = vpop.permute.xlu2 %448 }
 0x102   : > { %v558_v56 = vmul.f32 %v853_v13, %v557_v45  ;;  %v612_v57 = vsub.f32 1.5, %v611_v46  ;;  %468 = vst [vmem:[%s1260_s10 + $0x18] sm:$0xff] %v464_v43  ;;  %vm616_vm13 = vmor %vm614_vm12, %vm615_vm10 }
 0x103   : > { %520 = vst [vmem:[%s1260_s10 + $0x20] sm:$0xff] %v516_v31  ;;  %v438_v59 = vmul.f32 %v1237_v11, %v414_v54  ;;  %v513_v60 = vmul.f32 %v509_v55, %v1237_v11 }
 0x104   : > { %v562_v26 = vsel %vm561_vm11, %v853_v13, %v558_v56  ;;  %v613_v0 = vmul.f32 %v855_v17, %v612_v57  ;;  %523 = vst [vmem:[%s1260_s10 + $0x38] sm:$0xff] %v519_v29 }
 0x105   : > { %v566_v35 = vmul.f32 %v562_v26, %v1191_v1  ;;  %v563_v6 = vmul.f32 %v562_v26, %v1183_v61  ;;  %467 = vst [vmem:[%s1260_s10 + $0x10] sm:$0xff] %v463_v52  ;;  %v565_v40 = vmul.f32 %v562_v26, %v1189_v63  ;;  %v462_v7 = vadd.f32 %v449_v30, %v438_v59 }
 0x106   : > { %v617_v8 = vsel %vm616_vm13, %v855_v17, %v613_v0  ;;  %522 = vst [vmem:[%s1260_s10 + $0x30] sm:$0xff] %v518_v58  ;;  %v517_v9 = vadd.f32 %v513_v60, %v449_v30  ;;  %v564_v10 = vmul.f32 %v562_v26, %v1186_v62 }
 0x107   : > { %v621_v50 = vmul.f32 %v617_v8, %v1209_v36  ;;  %v567_v12 = vmul.f32 %v563_v6, %v1225_v53  ;;  %v618_v1 = vmul.f32 %v617_v8, %v1194_v2  ;;  %v570_v61 = vmul.f32 %v566_v35, %v1234_v41  ;;  %466 = vst [vmem:[%s1260_s10 + $0x8] sm:$0xff] %v462_v7 }
 0x108   : > { %v569_v15 = vmul.f32 %v565_v40, %v1223_v48  ;;  %v620_v63 = vmul.f32 %v617_v8, %v1206_v4  ;;  %521 = vst [vmem:[%s1260_s10 + $0x28] sm:$0xff] %v517_v9  ;;  %v568_v62 = vmul.f32 %v564_v10, %v1237_v11  ;;  %v619_v13 = vmul.f32 %v617_v8, %v1197_v3 }
 0x109   : > { %v622_v36 = vmul.f32 %v618_v1, %v1225_v53  ;;  %v571_v14 = vadd.f32 %v567_v12, %v1241_v5  ;;  %v574_v2 = vadd.f32 %v570_v61, %v459_v34  ;;  %v625_v51 = vmul.f32 %v621_v50, %v1234_v41 }
 0x10a   : > { %v624_v4 = vmul.f32 %v620_v63, %v1223_v48  ;;  %v623_v16 = vmul.f32 %v619_v13, %v1237_v11  ;;  %v573_v17 = vadd.f32 %v569_v15, %v454_v47  ;;  %v572_v18 = vadd.f32 %v568_v62, %v449_v30 }
 0x10b   : > { %575 = vst [vmem:[%s1260_s10 + $0x40] sm:$0xff] %v571_v14  ;;  %v626_v3 = vadd.f32 %v622_v36, %v1241_v5  ;;  %v629_v53 = vadd.f32 %v625_v51, %v459_v34 }
 0x10c   : > { %578 = vst [vmem:[%s1260_s10 + $0x58] sm:$0xff] %v574_v2  ;;  %v628_v41 = vadd.f32 %v624_v4, %v454_v47  ;;  %v627_v48 = vadd.f32 %v623_v16, %v449_v30 }
 0x10d   : > { %630 = vst [vmem:[%s1260_s10 + $0x60] sm:$0xff] %v626_v3 }
 0x10e   : > { %633 = vst [vmem:[%s1260_s10 + $0x78] sm:$0xff] %v629_v53 }
 0x10f   : > { %577 = vst [vmem:[%s1260_s10 + $0x50] sm:$0xff] %v573_v17 }
 0x110   : > { %632 = vst [vmem:[%s1260_s10 + $0x70] sm:$0xff] %v628_v41 }
 0x111   : > { %576 = vst [vmem:[%s1260_s10 + $0x48] sm:$0xff] %v572_v18 }
 0x112   : > { %631 = vst [vmem:[%s1260_s10 + $0x68] sm:$0xff] %v627_v48 }
 0x113   : > { %883 = shalt.err (!%p880_p5)
}
 0x114   : > { %s938_s8 = smov 128   ;;  %s939_s9 = smov 8  }
 0x115   : > { %784 = dma.vmem_to_hbm [thread:$0]  (%p1005_p4), %s649_s14, 2048, %s651_s21, %s635_s22, %s938_s8, %s938_s8, %s939_s9  }
 0x116 PF: > { %p790_p6 = scmp.ge.s32.totalorder %s934_s20, 2  ;;  %s665_s10 = sand.u32 1, %s914_s15  }
 0x117   : > { %s666_s11 = scalar_lea.sflag [#allocation3], %s665_s10 }
 0x118   : > { %p787_p7 = pnand %p790_p6, %p1012_p8 }
 0x11a   : > { %p788_p9 = pneg %p787_p7 }
 0x11c   : > { %909 = dma.done.wait (%p788_p9), %s666_s11, 2048  }
 0x11d   : > { %911 = vsyncadd (%p788_p9), %s666_s11, 4294965248  ;;  %s17_s20 = sadd.s32 1, %s934_s20   ;;  %s1351_s15 = smov %s918_s16 }
 0x11e   : > { %p14_p10 = scmp.ge.s32.totalorder %s17_s20, 4   ;;  %s1352_s16 = smov %s922_s17 }
 0x11f   : > { %s1353_s17 = smov %s1018_s28  ;;  %s1354_s18 = smov %s930_s19 }
 0x120   : > { %s1355_s19 = smov %s1357_s23  ;;  %16 = sbr.rel (!%p14_p10) target bundleno = 4 (0x4), region = 71 }
 0x125   :  { %672 = vsyncpa [#allocation3], 1 }
 0x126   :  { %674 = vsyncpa [#allocation3 + $0x1], 1 }

</bundles_post_ra>
